<compile_context>
chip_gen: v5e
topology: v5e:2x2
jax: 0.10.0
libtpu: 0.0.40
codegen_flags: <defaults>
</compile_context>

<pallas_src>
import math
import functools

import jax
import jax.numpy as jnp
from jax import lax
from jax.experimental import pallas as pl
from jax.experimental.pallas import tpu as pltpu


def _pick_head_group(n_heads, d_head, target=256, cap=1024):
    """Smallest divisor G of n_heads with G*d_head >= target (MXU width),
    capped so grouped weight tiles stay VMEM-friendly."""
    best = 1
    for g in range(1, n_heads + 1):
        if n_heads % g:
            continue
        if g * d_head <= cap:
            best = g
        if g * d_head >= target:
            break
    return best


def _pick_q_tile(seq_len):
    """Query-tile size: tile long sequences so live VMEM scales with tq, not S."""
    for t in (512, 256, 128):
        if seq_len % t == 0 and seq_len // t >= 2:
            return t
    return seq_len


def _self_attention_kernel(xq_ref, xkv_ref, w_ref, b_ref, wo_ref, bo_ref,
                           o_ref, acc_ref, attn_ref, *, n_group_heads, d_head):
    """Grid = (batch, query_tile, head_group). Head-group axis is the reduction.

    xq_ref:   (1, tq, Dp)        query-tile rows of x
    xkv_ref:  (1, S,  Dp)        full-sequence x (for K/V)
    w_ref:    (1, Dp, 3*G*dh)    grouped QKV weights, columns (qkv, head, dh);
                                 1/sqrt(dh) already folded into the q columns
    b_ref:    (1, 1, 3*G*dh)     grouped QKV bias (same column order)
    wo_ref:   (1, G*dh, Dp)      this group's rows of W_out.T
    bo_ref:   (1, Dp)            out_proj bias
    o_ref:    (1, tq, Dp)        output tile (written on the last head group)
    acc_ref:  (tq, Dp)  f32      out-proj accumulator across head groups
    attn_ref: (tq, G*dh)         per-group attention output assembly buffer
    """
    hg = pl.program_id(2)
    G, dh = n_group_heads, d_head
    gdh = G * dh

    @pl.when(hg == 0)
    def _():
        acc_ref[...] = jnp.zeros_like(acc_ref)

    xq = xq_ref[0]                     # (tq, Dp)
    xkv = xkv_ref[0]                   # (S,  Dp)
    cdt = xq.dtype                     # MXU operand dtype
    w = w_ref[0]                       # (Dp, 3*gdh)
    b = b_ref[0].astype(jnp.float32)   # (1, 3*gdh)

    # Q projection for this query tile (scale pre-folded into Wq / bq).
    q_all = (jnp.dot(xq, w[:, :gdh], preferred_element_type=jnp.float32)
             + b[:, :gdh]).astype(cdt)                           # (tq, gdh)
    # K/V projection over the full sequence, one wide MXU call.
    kv_all = (jnp.dot(xkv, w[:, gdh:], preferred_element_type=jnp.float32)
              + b[:, gdh:]).astype(cdt)                          # (S, 2*gdh)

    for h in range(G):                 # static unroll; per-head softmax
        q_h = q_all[:, h * dh:(h + 1) * dh]                      # (tq, dh)
        k_h = kv_all[:, h * dh:(h + 1) * dh]                     # (S,  dh)
        v_h = kv_all[:, gdh + h * dh: gdh + (h + 1) * dh]        # (S,  dh)

        # scores = q k^T — contract last dims directly (no transpose).
        s = lax.dot_general(q_h, k_h, (((1,), (1,)), ((), ())),
                            preferred_element_type=jnp.float32)  # (tq, S) f32
        s = s - jnp.max(s, axis=-1, keepdims=True)
        p = jnp.exp(s)                                           # unnormalized
        l = jnp.sum(p, axis=-1, keepdims=True)                   # (tq, 1)

        pv = jnp.dot(p.astype(cdt), v_h,
                     preferred_element_type=jnp.float32)         # (tq, dh) f32
        # Deferred normalization: S*dh multiplies instead of S^2.
        attn_ref[:, h * dh:(h + 1) * dh] = (
            pv * pl.reciprocal(l, approx=True)).astype(attn_ref.dtype)

    # This head group's contribution to out_proj, accumulated in f32.
    acc_ref[...] += jnp.dot(attn_ref[...], wo_ref[0],
                            preferred_element_type=jnp.float32)  # (tq, Dp)

    @pl.when(hg == pl.num_programs(2) - 1)
    def _():
        o_ref[0] = (acc_ref[...]
                    + bo_ref[...].astype(jnp.float32)).astype(o_ref.dtype)


def self_attention(x, w_in, b_in, w_out, b_out, *, n_heads, mxu_dtype=None):
    """x: (B, S, D). w_in: (3D, D), b_in: (3D,), w_out: (D, D), b_out: (D,).

    mxu_dtype: optional dtype (e.g. jnp.bfloat16) for MXU operand feeds on f32
    inputs; accumulation stays f32, output dtype stays x.dtype.
    """
    B, S, D = x.shape
    H = n_heads
    assert D % H == 0
    dh = D // H
    scale = 1.0 / math.sqrt(dh)

    # ---- Weight prep on the XLA side (outside the kernel) --------------------
    # Fold 1/sqrt(dh) into Wq / bq (rows [0:D] of the in-proj).
    w_in_s = jnp.concatenate([w_in[:D] * scale, w_in[D:]], axis=0)   # (3D, D)
    b_in_s = jnp.concatenate([b_in[:D] * scale, b_in[D:]], axis=0)   # (3D,)

    G = _pick_head_group(H, dh)        # heads per group (G*dh aims for >= 256)
    HG = H // G
    gdh = G * dh

    # Grouped, pre-transposed QKV weights: (HG, D, 3*G*dh), cols (qkv, head, dh).
    w_qkv = (jnp.transpose(w_in_s).reshape(D, 3, HG, G, dh)
             .transpose(2, 0, 1, 3, 4).reshape(HG, D, 3 * gdh))
    b_qkv = (b_in_s.reshape(3, HG, G, dh)
             .transpose(1, 0, 2, 3).reshape(HG, 1, 3 * gdh))
    # Grouped out-proj rows of W_out.T: (HG, G*dh, D), rows ordered (head, dh).
    w_out_g = jnp.transpose(w_out).reshape(HG, gdh, D)
    b_out2 = b_out.reshape(1, D)

    # ---- Pad model dim to a multiple of 128 (lane-dense MXU feeds & stores) --
    LANE = 128
    Dp = ((D + LANE - 1) // LANE) * LANE
    x_p = x
    if Dp != D:
        pad = Dp - D
        x_p = jnp.pad(x, ((0, 0), (0, 0), (0, pad)))
        w_qkv = jnp.pad(w_qkv, ((0, 0), (0, pad), (0, 0)))
        w_out_g = jnp.pad(w_out_g, ((0, 0), (0, 0), (0, pad)))
        b_out2 = jnp.pad(b_out2, ((0, 0), (0, pad)))

    # Optional narrower MXU operand mode (f32 accumulation preserved).
    cdt = mxu_dtype if mxu_dtype is not None else x.dtype
    if mxu_dtype is not None:
        x_p = x_p.astype(cdt)
        w_qkv = w_qkv.astype(cdt)
        w_out_g = w_out_g.astype(cdt)

    tq = _pick_q_tile(S)
    nqt = S // tq

    # ---- VMEM budget (double-buffered blocks + scratch + live intermediates) -
    isz = jnp.dtype(cdt).itemsize
    f32 = 4
    block_bytes = 2 * (tq * Dp * isz          # x query tile
                       + S * Dp * isz         # x full (K/V)
                       + Dp * 3 * gdh * isz   # grouped QKV weights
                       + 3 * gdh * isz        # grouped QKV bias
                       + gdh * Dp * isz       # grouped out-proj weights
                       + Dp * isz             # out-proj bias
                       + tq * Dp * isz)       # output tile
    scratch_bytes = tq * Dp * f32 + tq * gdh * isz
    live_bytes = (tq * S * f32 * 2                     # scores + exp
                  + S * 2 * gdh * (f32 + isz)          # K/V projection
                  + tq * gdh * (f32 + isz) * 2)        # Q projection / PV
    est = block_bytes + scratch_bytes + live_bytes
    vmem_limit = int(min(max(2 * est, 32 << 20), 64 << 20))  # safe on v7x's 64 MiB

    kernel = functools.partial(_self_attention_kernel,
                               n_group_heads=G, d_head=dh)

    out = pl.pallas_call(
        kernel,
        out_shape=jax.ShapeDtypeStruct((B, S, Dp), x.dtype),
        grid_spec=pltpu.PrefetchScalarGridSpec(
            num_scalar_prefetch=0,
            grid=(B, nqt, HG),                       # head groups = reduction, last
            in_specs=[
                pl.BlockSpec((1, tq, Dp), lambda b, qt, hg: (b, qt, 0)),   # x (Q tile)
                pl.BlockSpec((1, S, Dp), lambda b, qt, hg: (b, 0, 0)),     # x (K/V full)
                pl.BlockSpec((1, Dp, 3 * gdh), lambda b, qt, hg: (hg, 0, 0)),  # W_qkv grp
                pl.BlockSpec((1, 1, 3 * gdh), lambda b, qt, hg: (hg, 0, 0)),   # b_qkv grp
                pl.BlockSpec((1, gdh, Dp), lambda b, qt, hg: (hg, 0, 0)),      # W_out grp
                pl.BlockSpec((1, Dp), lambda b, qt, hg: (0, 0)),               # b_out
            ],
            out_specs=pl.BlockSpec((1, tq, Dp), lambda b, qt, hg: (b, qt, 0)),
            scratch_shapes=[pltpu.VMEM((tq, Dp), jnp.float32),   # out-proj accumulator
                            pltpu.VMEM((tq, gdh), cdt)],         # per-group attn buffer
        ),
        compiler_params=pltpu.CompilerParams(
            dimension_semantics=("parallel", "parallel", "arbitrary"),
            vmem_limit_bytes=vmem_limit),
    )(x_p, x_p, w_qkv, b_qkv, w_out_g, b_out2)

    return out[..., :D] if Dp != D else out


def _reference(x, w_in, b_in, w_out, b_out, n_heads):
    """Pure-JAX reference mirroring the PyTorch forward (casual_mask=False)."""
    B, S, D = x.shape
    d_head = D // n_heads
    qkv = x @ w_in.T + b_in
    q, k, v = jnp.split(qkv, 3, axis=-1)

    def heads(t):
        return t.reshape(B, S, n_heads, d_head).transpose(0, 2, 1, 3)

    q, k, v = heads(q), heads(k), heads(v)
    w = jnp.einsum('bhqd,bhkd->bhqk', q, k) / math.sqrt(d_head)
    w = jax.nn.softmax(w, axis=-1)
    out = jnp.einsum('bhqk,bhkd->bhqd', w, v)
    out = out.transpose(0, 2, 1, 3).reshape(B, S, D)
    return out @ w_out.T + b_out


if __name__ == "__main__":
    key = jax.random.PRNGKey(0)
    batch, seq, d_embed, n_heads = 2, 8, 32, 4

    k_x, k_wi, k_bi, k_wo, k_bo = jax.random.split(key, 5)
    x = jax.random.normal(k_x, (batch, seq, d_embed), dtype=jnp.float32)

    bound = 1.0 / math.sqrt(d_embed)
    w_in = jax.random.uniform(k_wi, (3 * d_embed, d_embed), jnp.float32, -bound, bound)
    b_in = jax.random.uniform(k_bi, (3 * d_embed,), jnp.float32, -bound, bound)
    w_out = jax.random.uniform(k_wo, (d_embed, d_embed), jnp.float32, -bound, bound)
    b_out = jax.random.uniform(k_bo, (d_embed,), jnp.float32, -bound, bound)

    out = self_attention(x, w_in, b_in, w_out, b_out, n_heads=n_heads)
    out = jax.block_until_ready(out)

    ref = _reference(x, w_in, b_in, w_out, b_out, n_heads)
    assert out.shape == (batch, seq, d_embed)
    # Tolerance accommodates the approximate (EUP) reciprocal used for the
    # deferred softmax normalization; everything else is f32-accumulated.
    err = jnp.max(jnp.abs(out - ref))
    assert jnp.allclose(out, ref, atol=2e-3, rtol=2e-3), f"max err {err}"

    print("KERNEL_OK")
</pallas_src>

<mosaic_0001>
module attributes {stable_mosaic.version = 11 : i64} {
  func.func @_self_attention_kernel(%arg0: i32, %arg1: i32, %arg2: i32, %arg3: memref<1x8x128xf32, #tpu.memory_space<vmem>>, %arg4: memref<1x8x128xf32, #tpu.memory_space<vmem>>, %arg5: memref<1x128x96xf32, #tpu.memory_space<vmem>>, %arg6: memref<1x1x96xf32, #tpu.memory_space<vmem>>, %arg7: memref<1x32x128xf32, #tpu.memory_space<vmem>>, %arg8: memref<1x128xf32, #tpu.memory_space<vmem>>, %arg9: memref<1x8x128xf32, #tpu.memory_space<vmem>>, %arg10: memref<8x128xf32, #tpu.memory_space<vmem>>, %arg11: memref<8x32xf32, #tpu.memory_space<vmem>>) attributes {dimension_semantics = [#tpu.dimension_semantics<parallel>, #tpu.dimension_semantics<parallel>, #tpu.dimension_semantics<arbitrary>], iteration_bounds = array<i64: 2, 1, 1>, scalar_prefetch = 0 : i64, scratch_operands = 2 : i64, tpu.core_type = #tpu.core_type<tc>, window_params = [{transform_indices = @transform_0, window_bounds = array<i64: 1, 8, 128>}, {transform_indices = @transform_1, window_bounds = array<i64: 1, 8, 128>}, {transform_indices = @transform_2, window_bounds = array<i64: 1, 128, 96>}, {transform_indices = @transform_3, window_bounds = array<i64: 1, 1, 96>}, {transform_indices = @transform_4, window_bounds = array<i64: 1, 32, 128>}, {pipeline_mode = #tpu.pipeline_mode<synchronous>, transform_indices = @transform_5, window_bounds = array<i64: 1, 128>}, {transform_indices = @transform_6, window_bounds = array<i64: 1, 8, 128>}]} {
    %c0_i32 = arith.constant 0 : i32
    %0 = arith.cmpi eq, %arg2, %c0_i32 : i32
    %1 = arith.extui %0 : i1 to i32
    %c0_i32_0 = arith.constant 0 : i32
    %2 = arith.cmpi ne, %1, %c0_i32_0 : i32
    scf.if %2 {
      %cst_46 = arith.constant 0.000000e+00 : f32
      %95 = vector.broadcast %cst_46 : f32 to vector<8x128xf32>
      %c0_47 = arith.constant 0 : index
      %c0_48 = arith.constant 0 : index
      %96 = vector.load %arg10[%c0_47, %c0_48] : memref<8x128xf32, #tpu.memory_space<vmem>>, vector<8x128xf32>
      tpu.vector_store %arg10[%c0_47, %c0_48], %95 {strides = array<i32>} : memref<8x128xf32, #tpu.memory_space<vmem>>, vector<8x128xf32>,
    } else {
    }
    %c0 = arith.constant 0 : index
    %c0_1 = arith.constant 0 : index
    %c0_2 = arith.constant 0 : index
    %3 = vector.load %arg3[%c0, %c0_1, %c0_2] : memref<1x8x128xf32, #tpu.memory_space<vmem>>, vector<1x8x128xf32>
    %4 = vector.shape_cast %3 : vector<1x8x128xf32> to vector<8x128xf32>
    %c0_3 = arith.constant 0 : index
    %c0_4 = arith.constant 0 : index
    %c0_5 = arith.constant 0 : index
    %5 = vector.load %arg4[%c0_3, %c0_4, %c0_5] : memref<1x8x128xf32, #tpu.memory_space<vmem>>, vector<1x8x128xf32>
    %6 = vector.shape_cast %5 : vector<1x8x128xf32> to vector<8x128xf32>
    %c0_6 = arith.constant 0 : index
    %c0_7 = arith.constant 0 : index
    %c0_8 = arith.constant 0 : index
    %7 = vector.load %arg5[%c0_6, %c0_7, %c0_8] : memref<1x128x96xf32, #tpu.memory_space<vmem>>, vector<1x128x96xf32>
    %8 = vector.shape_cast %7 : vector<1x128x96xf32> to vector<128x96xf32>
    %c0_9 = arith.constant 0 : index
    %c0_10 = arith.constant 0 : index
    %c0_11 = arith.constant 0 : index
    %9 = vector.load %arg6[%c0_9, %c0_10, %c0_11] : memref<1x1x96xf32, #tpu.memory_space<vmem>>, vector<1x1x96xf32>
    %10 = vector.shape_cast %9 : vector<1x1x96xf32> to vector<1x96xf32>
    %11 = vector.extract_strided_slice %8 {offsets = [0, 0], sizes = [128, 32], strides = [1, 1]} : vector<128x96xf32> to vector<128x32xf32>
    %cst = arith.constant dense<0.000000e+00> : vector<8x32xf32>
    %12 = tpu.matmul %4, %11, %cst {dimension_numbers = #tpu.dot_dimension_numbers<[1], [0], [0], [1], [0, 0, 1, 1], [], []>} : vector<8x128xf32>, vector<128x32xf32>, vector<8x32xf32> -> vector<8x32xf32>
    %13 = vector.extract_strided_slice %10 {offsets = [0, 0], sizes = [1, 32], strides = [1, 1]} : vector<1x96xf32> to vector<1x32xf32>
    %14 = vector.broadcast %13 : vector<1x32xf32> to vector<8x32xf32>
    %15 = arith.addf %12, %14 : vector<8x32xf32>
    %16 = vector.extract_strided_slice %8 {offsets = [0, 32], sizes = [128, 64], strides = [1, 1]} : vector<128x96xf32> to vector<128x64xf32>
    %cst_12 = arith.constant dense<0.000000e+00> : vector<8x64xf32>
    %17 = tpu.matmul %6, %16, %cst_12 {dimension_numbers = #tpu.dot_dimension_numbers<[1], [0], [0], [1], [0, 0, 1, 1], [], []>} : vector<8x128xf32>, vector<128x64xf32>, vector<8x64xf32> -> vector<8x64xf32>
    %18 = vector.extract_strided_slice %10 {offsets = [0, 32], sizes = [1, 64], strides = [1, 1]} : vector<1x96xf32> to vector<1x64xf32>
    %19 = vector.broadcast %18 : vector<1x64xf32> to vector<8x64xf32>
    %20 = arith.addf %17, %19 : vector<8x64xf32>
    %21 = vector.extract_strided_slice %15 {offsets = [0, 0], sizes = [8, 8], strides = [1, 1]} : vector<8x32xf32> to vector<8x8xf32>
    %22 = vector.extract_strided_slice %20 {offsets = [0, 0], sizes = [8, 8], strides = [1, 1]} : vector<8x64xf32> to vector<8x8xf32>
    %23 = vector.extract_strided_slice %20 {offsets = [0, 32], sizes = [8, 8], strides = [1, 1]} : vector<8x64xf32> to vector<8x8xf32>
    %cst_13 = arith.constant dense<0.000000e+00> : vector<8x8xf32>
    %24 = tpu.matmul %21, %22, %cst_13 {dimension_numbers = #tpu.dot_dimension_numbers<[1], [1], [0], [0], [0, 0, 1, 0], [], []>} : vector<8x8xf32>, vector<8x8xf32>, vector<8x8xf32> -> vector<8x8xf32>
    %cst_14 = arith.constant dense<0xFF800000> : vector<8xf32>
    %25 = vector.multi_reduction <maximumf>, %24, %cst_14 [1] : vector<8x8xf32> to vector<8xf32>
    %26 = vector.shape_cast %25 : vector<8xf32> to vector<8x1xf32>
    %27 = vector.broadcast %26 : vector<8x1xf32> to vector<8x8xf32>
    %28 = arith.subf %24, %27 : vector<8x8xf32>
    %29 = math.exp %28 : vector<8x8xf32>
    %cst_15 = arith.constant dense<0.000000e+00> : vector<8xf32>
    %30 = vector.multi_reduction <add>, %29, %cst_15 [1] : vector<8x8xf32> to vector<8xf32>
    %31 = vector.shape_cast %30 : vector<8xf32> to vector<8x1xf32>
    %cst_16 = arith.constant dense<0.000000e+00> : vector<8x8xf32>
    %32 = tpu.matmul %29, %23, %cst_16 {dimension_numbers = #tpu.dot_dimension_numbers<[1], [0], [0], [1], [0, 0, 1, 1], [], []>} : vector<8x8xf32>, vector<8x8xf32>, vector<8x8xf32> -> vector<8x8xf32>
    %33 = tpu.reciprocal %31 {approx = true} : vector<8x1xf32> -> vector<8x1xf32>
    %34 = vector.broadcast %33 : vector<8x1xf32> to vector<8x8xf32>
    %35 = arith.mulf %32, %34 : vector<8x8xf32>
    %c0_17 = arith.constant 0 : index
    %c0_18 = arith.constant 0 : index
    %36 = vector.load %arg11[%c0_17, %c0_18] : memref<8x32xf32, #tpu.memory_space<vmem>>, vector<8x8xf32>
    tpu.vector_store %arg11[%c0_17, %c0_18], %35 {strides = array<i32>} : memref<8x32xf32, #tpu.memory_space<vmem>>, vector<8x8xf32>,
    %37 = vector.extract_strided_slice %15 {offsets = [0, 8], sizes = [8, 8], strides = [1, 1]} : vector<8x32xf32> to vector<8x8xf32>
    %38 = vector.extract_strided_slice %20 {offsets = [0, 8], sizes = [8, 8], strides = [1, 1]} : vector<8x64xf32> to vector<8x8xf32>
    %39 = vector.extract_strided_slice %20 {offsets = [0, 40], sizes = [8, 8], strides = [1, 1]} : vector<8x64xf32> to vector<8x8xf32>
    %cst_19 = arith.constant dense<0.000000e+00> : vector<8x8xf32>
    %40 = tpu.matmul %37, %38, %cst_19 {dimension_numbers = #tpu.dot_dimension_numbers<[1], [1], [0], [0], [0, 0, 1, 0], [], []>} : vector<8x8xf32>, vector<8x8xf32>, vector<8x8xf32> -> vector<8x8xf32>
    %cst_20 = arith.constant dense<0xFF800000> : vector<8xf32>
    %41 = vector.multi_reduction <maximumf>, %40, %cst_20 [1] : vector<8x8xf32> to vector<8xf32>
    %42 = vector.shape_cast %41 : vector<8xf32> to vector<8x1xf32>
    %43 = vector.broadcast %42 : vector<8x1xf32> to vector<8x8xf32>
    %44 = arith.subf %40, %43 : vector<8x8xf32>
    %45 = math.exp %44 : vector<8x8xf32>
    %cst_21 = arith.constant dense<0.000000e+00> : vector<8xf32>
    %46 = vector.multi_reduction <add>, %45, %cst_21 [1] : vector<8x8xf32> to vector<8xf32>
    %47 = vector.shape_cast %46 : vector<8xf32> to vector<8x1xf32>
    %cst_22 = arith.constant dense<0.000000e+00> : vector<8x8xf32>
    %48 = tpu.matmul %45, %39, %cst_22 {dimension_numbers = #tpu.dot_dimension_numbers<[1], [0], [0], [1], [0, 0, 1, 1], [], []>} : vector<8x8xf32>, vector<8x8xf32>, vector<8x8xf32> -> vector<8x8xf32>
    %49 = tpu.reciprocal %47 {approx = true} : vector<8x1xf32> -> vector<8x1xf32>
    %50 = vector.broadcast %49 : vector<8x1xf32> to vector<8x8xf32>
    %51 = arith.mulf %48, %50 : vector<8x8xf32>
    %c0_23 = arith.constant 0 : index
    %c8 = arith.constant 8 : index
    %52 = vector.load %arg11[%c0_23, %c8] : memref<8x32xf32, #tpu.memory_space<vmem>>, vector<8x8xf32>
    tpu.vector_store %arg11[%c0_23, %c8], %51 {strides = array<i32>} : memref<8x32xf32, #tpu.memory_space<vmem>>, vector<8x8xf32>,
    %53 = vector.extract_strided_slice %15 {offsets = [0, 16], sizes = [8, 8], strides = [1, 1]} : vector<8x32xf32> to vector<8x8xf32>
    %54 = vector.extract_strided_slice %20 {offsets = [0, 16], sizes = [8, 8], strides = [1, 1]} : vector<8x64xf32> to vector<8x8xf32>
    %55 = vector.extract_strided_slice %20 {offsets = [0, 48], sizes = [8, 8], strides = [1, 1]} : vector<8x64xf32> to vector<8x8xf32>
    %cst_24 = arith.constant dense<0.000000e+00> : vector<8x8xf32>
    %56 = tpu.matmul %53, %54, %cst_24 {dimension_numbers = #tpu.dot_dimension_numbers<[1], [1], [0], [0], [0, 0, 1, 0], [], []>} : vector<8x8xf32>, vector<8x8xf32>, vector<8x8xf32> -> vector<8x8xf32>
    %cst_25 = arith.constant dense<0xFF800000> : vector<8xf32>
    %57 = vector.multi_reduction <maximumf>, %56, %cst_25 [1] : vector<8x8xf32> to vector<8xf32>
    %58 = vector.shape_cast %57 : vector<8xf32> to vector<8x1xf32>
    %59 = vector.broadcast %58 : vector<8x1xf32> to vector<8x8xf32>
    %60 = arith.subf %56, %59 : vector<8x8xf32>
    %61 = math.exp %60 : vector<8x8xf32>
    %cst_26 = arith.constant dense<0.000000e+00> : vector<8xf32>
    %62 = vector.multi_reduction <add>, %61, %cst_26 [1] : vector<8x8xf32> to vector<8xf32>
    %63 = vector.shape_cast %62 : vector<8xf32> to vector<8x1xf32>
    %cst_27 = arith.constant dense<0.000000e+00> : vector<8x8xf32>
    %64 = tpu.matmul %61, %55, %cst_27 {dimension_numbers = #tpu.dot_dimension_numbers<[1], [0], [0], [1], [0, 0, 1, 1], [], []>} : vector<8x8xf32>, vector<8x8xf32>, vector<8x8xf32> -> vector<8x8xf32>
    %65 = tpu.reciprocal %63 {approx = true} : vector<8x1xf32> -> vector<8x1xf32>
    %66 = vector.broadcast %65 : vector<8x1xf32> to vector<8x8xf32>
    %67 = arith.mulf %64, %66 : vector<8x8xf32>
    %c0_28 = arith.constant 0 : index
    %c16 = arith.constant 16 : index
    %68 = vector.load %arg11[%c0_28, %c16] : memref<8x32xf32, #tpu.memory_space<vmem>>, vector<8x8xf32>
    tpu.vector_store %arg11[%c0_28, %c16], %67 {strides = array<i32>} : memref<8x32xf32, #tpu.memory_space<vmem>>, vector<8x8xf32>,
    %69 = vector.extract_strided_slice %15 {offsets = [0, 24], sizes = [8, 8], strides = [1, 1]} : vector<8x32xf32> to vector<8x8xf32>
    %70 = vector.extract_strided_slice %20 {offsets = [0, 24], sizes = [8, 8], strides = [1, 1]} : vector<8x64xf32> to vector<8x8xf32>
    %71 = vector.extract_strided_slice %20 {offsets = [0, 56], sizes = [8, 8], strides = [1, 1]} : vector<8x64xf32> to vector<8x8xf32>
    %cst_29 = arith.constant dense<0.000000e+00> : vector<8x8xf32>
    %72 = tpu.matmul %69, %70, %cst_29 {dimension_numbers = #tpu.dot_dimension_numbers<[1], [1], [0], [0], [0, 0, 1, 0], [], []>} : vector<8x8xf32>, vector<8x8xf32>, vector<8x8xf32> -> vector<8x8xf32>
    %cst_30 = arith.constant dense<0xFF800000> : vector<8xf32>
    %73 = vector.multi_reduction <maximumf>, %72, %cst_30 [1] : vector<8x8xf32> to vector<8xf32>
    %74 = vector.shape_cast %73 : vector<8xf32> to vector<8x1xf32>
    %75 = vector.broadcast %74 : vector<8x1xf32> to vector<8x8xf32>
    %76 = arith.subf %72, %75 : vector<8x8xf32>
    %77 = math.exp %76 : vector<8x8xf32>
    %cst_31 = arith.constant dense<0.000000e+00> : vector<8xf32>
    %78 = vector.multi_reduction <add>, %77, %cst_31 [1] : vector<8x8xf32> to vector<8xf32>
    %79 = vector.shape_cast %78 : vector<8xf32> to vector<8x1xf32>
    %cst_32 = arith.constant dense<0.000000e+00> : vector<8x8xf32>
    %80 = tpu.matmul %77, %71, %cst_32 {dimension_numbers = #tpu.dot_dimension_numbers<[1], [0], [0], [1], [0, 0, 1, 1], [], []>} : vector<8x8xf32>, vector<8x8xf32>, vector<8x8xf32> -> vector<8x8xf32>
    %81 = tpu.reciprocal %79 {approx = true} : vector<8x1xf32> -> vector<8x1xf32>
    %82 = vector.broadcast %81 : vector<8x1xf32> to vector<8x8xf32>
    %83 = arith.mulf %80, %82 : vector<8x8xf32>
    %c0_33 = arith.constant 0 : index
    %c24 = arith.constant 24 : index
    %84 = vector.load %arg11[%c0_33, %c24] : memref<8x32xf32, #tpu.memory_space<vmem>>, vector<8x8xf32>
    tpu.vector_store %arg11[%c0_33, %c24], %83 {strides = array<i32>} : memref<8x32xf32, #tpu.memory_space<vmem>>, vector<8x8xf32>,
    %c0_34 = arith.constant 0 : index
    %c0_35 = arith.constant 0 : index
    %85 = vector.load %arg10[%c0_34, %c0_35] : memref<8x128xf32, #tpu.memory_space<vmem>>, vector<8x128xf32>
    %c0_36 = arith.constant 0 : index
    %c0_37 = arith.constant 0 : index
    %86 = vector.load %arg11[%c0_36, %c0_37] : memref<8x32xf32, #tpu.memory_space<vmem>>, vector<8x32xf32>
    %c0_38 = arith.constant 0 : index
    %c0_39 = arith.constant 0 : index
    %c0_40 = arith.constant 0 : index
    %87 = vector.load %arg7[%c0_38, %c0_39, %c0_40] : memref<1x32x128xf32, #tpu.memory_space<vmem>>, vector<1x32x128xf32>
    %88 = vector.shape_cast %87 : vector<1x32x128xf32> to vector<32x128xf32>
    %cst_41 = arith.constant dense<0.000000e+00> : vector<8x128xf32>
    %89 = tpu.matmul %86, %88, %cst_41 {dimension_numbers = #tpu.dot_dimension_numbers<[1], [0], [0], [1], [0, 0, 1, 1], [], []>} : vector<8x32xf32>, vector<32x128xf32>, vector<8x128xf32> -> vector<8x128xf32>
    %90 = arith.addf %85, %89 : vector<8x128xf32>
    %c0_42 = arith.constant 0 : index
    %c0_43 = arith.constant 0 : index
    %91 = vector.load %arg10[%c0_42, %c0_43] : memref<8x128xf32, #tpu.memory_space<vmem>>, vector<8x128xf32>
    tpu.vector_store %arg10[%c0_42, %c0_43], %90 {strides = array<i32>} : memref<8x128xf32, #tpu.memory_space<vmem>>, vector<8x128xf32>,
    %c0_i32_44 = arith.constant 0 : i32
    %92 = arith.cmpi eq, %arg2, %c0_i32_44 : i32
    %93 = arith.extui %92 : i1 to i32
    %c0_i32_45 = arith.constant 0 : i32
    %94 = arith.cmpi ne, %93, %c0_i32_45 : i32
    scf.if %94 {
      %c0_46 = arith.constant 0 : index
      %c0_47 = arith.constant 0 : index
      %95 = vector.load %arg10[%c0_46, %c0_47] : memref<8x128xf32, #tpu.memory_space<vmem>>, vector<8x128xf32>
      %c0_48 = arith.constant 0 : index
      %c0_49 = arith.constant 0 : index
      %96 = vector.load %arg8[%c0_48, %c0_49] : memref<1x128xf32, #tpu.memory_space<vmem>>, vector<1x128xf32>
      %97 = vector.broadcast %96 : vector<1x128xf32> to vector<8x128xf32>
      %98 = arith.addf %95, %97 : vector<8x128xf32>
      %c0_50 = arith.constant 0 : index
      %c0_51 = arith.constant 0 : index
      %c0_52 = arith.constant 0 : index
      %99 = vector.load %arg9[%c0_50, %c0_51, %c0_52] : memref<1x8x128xf32, #tpu.memory_space<vmem>>, vector<1x8x128xf32>
      %100 = vector.shape_cast %99 : vector<1x8x128xf32> to vector<8x128xf32>
      %101 = vector.shape_cast %98 : vector<8x128xf32> to vector<1x8x128xf32>
      tpu.vector_store %arg9[%c0_50, %c0_51, %c0_52], %101 {strides = array<i32>} : memref<1x8x128xf32, #tpu.memory_space<vmem>>, vector<1x8x128xf32>,
    } else {
    }
    return
  }
  func.func @transform_0(%arg0: i32, %arg1: i32, %arg2: i32) -> (i32, i32, i32) {
    %c0_i32 = arith.constant 0 : i32
    %c0_i32_0 = arith.constant 0 : i32
    return %arg0, %arg1, %c0_i32 : i32, i32, i32
  }
  func.func @transform_1(%arg0: i32, %arg1: i32, %arg2: i32) -> (i32, i32, i32) {
    %c0_i32 = arith.constant 0 : i32
    %c0_i32_0 = arith.constant 0 : i32
    %c0_i32_1 = arith.constant 0 : i32
    return %arg0, %c0_i32, %c0_i32_0 : i32, i32, i32
  }
  func.func @transform_2(%arg0: i32, %arg1: i32, %arg2: i32) -> (i32, i32, i32) {
    %c0_i32 = arith.constant 0 : i32
    %c0_i32_0 = arith.constant 0 : i32
    %c0_i32_1 = arith.constant 0 : i32
    return %arg2, %c0_i32, %c0_i32_0 : i32, i32, i32
  }
  func.func @transform_3(%arg0: i32, %arg1: i32, %arg2: i32) -> (i32, i32, i32) {
    %c0_i32 = arith.constant 0 : i32
    %c0_i32_0 = arith.constant 0 : i32
    %c0_i32_1 = arith.constant 0 : i32
    return %arg2, %c0_i32, %c0_i32_0 : i32, i32, i32
  }
  func.func @transform_4(%arg0: i32, %arg1: i32, %arg2: i32) -> (i32, i32, i32) {
    %c0_i32 = arith.constant 0 : i32
    %c0_i32_0 = arith.constant 0 : i32
    %c0_i32_1 = arith.constant 0 : i32
    return %arg2, %c0_i32, %c0_i32_0 : i32, i32, i32
  }
  func.func @transform_5(%arg0: i32, %arg1: i32, %arg2: i32) -> (i32, i32) {
    %c0_i32 = arith.constant 0 : i32
    %c0_i32_0 = arith.constant 0 : i32
    %c0_i32_1 = arith.constant 0 : i32
    return %c0_i32, %c0_i32_0 : i32, i32
  }
  func.func @transform_6(%arg0: i32, %arg1: i32, %arg2: i32) -> (i32, i32, i32) {
    %c0_i32 = arith.constant 0 : i32
    %c0_i32_0 = arith.constant 0 : i32
    return %arg0, %arg1, %c0_i32 : i32, i32, i32
  }
}

</mosaic_0001>

<bundles_post_ra>
// kernel: tpu_custom_call.1
= control target key start
LH: loop header
LB: loop body
LE: loop exit
PB: predicated region body
PF: predicated region fallthrough
CT: control target
= control target key end

     0   :  { %11 = vsyncpa [#allocation5], 0  ;;  %s1429_s0 = inlined_call_operand.vmem [shape: f32[2,8,128], index: 0, kind: input, shape index: {}]   ;;  %s1430_s1 = inlined_call_operand.vmem [shape: f32[2,8,128], index: 1, kind: input, shape index: {}]   ;;  %s1431_s2 = inlined_call_operand.vmem [shape: f32[1,128,96], index: 2, kind: input, shape index: {}]   ;;  %s1432_s3 = inlined_call_operand.vmem [shape: f32[1,1,96], index: 3, kind: input, shape index: {}]   ;;  %s1433_s4 = inlined_call_operand.vmem [shape: f32[1,32,128], index: 4, kind: input, shape index: {}]   ;;  %s1434_s5 = inlined_call_operand.vmem [shape: f32[1,128], index: 5, kind: input, shape index: {}]   ;;  %s1435_s6 = inlined_call_operand.hbm [shape: f32[2,8,128], index: 6, kind: output, shape index: {}]  }
   0x1   :  { %13 = vsyncpa [#allocation5 + $0x1], 0  ;;  %s1225_s21 = smov 0   ;;  %s1227_s22 = smov 0  }
   0x2   :  { %s1229_s23 = smov 0   ;;  %s1231_s24 = smov 0  }
   0x3   :  { %s1233_s25 = smov 0   ;;  %s1235_s26 = smov 0  }
   0x4 LB: > { %s949_s27 = sadd.s32 4294967295, %s1178_s26   ;;  %s950_s28 = sadd.s32 4294967294, %s1178_s26   ;;  %s1178_s26 = sphi %s1235_s26, %s19_s26   ;;  %s1174_s25 = sphi %s1233_s25, %s1442_s25   ;;  %s1170_s24 = sphi %s1231_s24, %s1441_s24   ;;  %s1166_s23 = sphi %s1229_s23, %s1440_s23   ;;  %s1162_s22 = sphi %s1227_s22, %s1439_s22   ;;  %s1158_s21 = sphi %s1225_s21, %s1438_s21  }
   0x5   : > { %s38_s29 = sadd.s32 1, %s1174_s25  ;;  %s200_s30 = sadd.s32 1, %s1166_s23 }
   0x6   : > { %p40_p0 = scmp.ge.s32.totalorder %s38_s29, 2  ;;  %p210_p1 = scmp.ne.s32.totalorder %s1166_s23, %s1162_s22 }
   0x7   : > { %p211_p2 = scmp.eq.s32.totalorder %s949_s27, 1  ;;  %p216_p3 = scmp.ne.s32.totalorder %s1162_s22, %s1158_s21 }
   0x8   : > { %s1444_s29 = smov (%p40_p0, %s38_s29), 0  ;;  %p217_p5 = scmp.eq.s32.totalorder %s950_s28, 1 }
   0x9   : > { %p1265_p4 = por %p211_p2, %p210_p1  ;;  %s195_s8 = ssub.s32 %s1174_s25, %s1444_s29 }
   0xa   : > { %p956_p6 = scmp.ge.s32.totalorder %s1178_s26, 1  ;;  %p198_p7 = scmp.eq.s32.totalorder %s195_s8, 0 }
   0xb   : > { %p1272_p8 = por %p217_p5, %p216_p3  ;;  %p277_p9 = scmp.lt.s32.totalorder %s1178_s26, 3 }
   0xc   : > { %s1278_s10 = scalar_select %p198_p7, %s1166_s23, %s200_s30  }
   0xd   : > { %p278_p10 = pnand %p956_p6, %p277_p9 }
   0xe   : > { %s1180_s19 = smov (!%p278_p10), 96   ;;  %p326_p11 = scmp.lt.s32.totalorder (!%p278_p10), %s1170_s24, 1 }
   0xf   : > { %281 = sbr.rel (%p278_p10) target bundleno = 1251 (0x4e3), region = 44  ;;  %s1181_s14 = smov (!%p278_p10), 120  }
  0x10   : > { %s1182_s15 = smov (!%p278_p10), 112   ;;  %s1183_s16 = smov (!%p278_p10), 104  }
  0x11   : > { %s1187_s20 = smov (!%p278_p10), 8   ;;  %s1188_s27 = smov (!%p278_p10), 16  }
  0x14   : > { %v371_v0 = vld [vmem:[%s1431_s2 + $0x70] sm:$0xff]  ;;  %v372_v1 = vld [vmem:[%s1431_s2 + $0x78] sm:$0xff]  ;;  %v369_v6 = vld [vmem:[%s1431_s2 + $0x60] sm:$0xff]  ;;  %s1338_s17 = scalar_select %p326_p11, %s1170_s24, 1  ;;  %vm484_vm0 = vcmask 64512   ;;  %vm618_vm1 = vcmask 130112  }
  0x15   : > { %v1042_v2 = vpack.i.bf16 %v371_v0, %v372_v1  ;;  %v367_v3 = vld [vmem:[%s1431_s2 + $0x50] sm:$0xff]  ;;  %v368_v4 = vld [vmem:[%s1431_s2 + $0x58] sm:$0xff]  ;;  %377 = vmatpush.msra.mxu0 %v372_v1  ;;  %v370_v7 = vld [vmem:[%s1431_s2 + $0x68] sm:$0xff]  ;;  %vm689_vm2 = vcmask 195712   ;;  %vm760_vm3 = vcmask 261312   ;;  %vm768_vm4 = vcmask 261120  }
  0x16   : > { %v1052_v5 = vpack.i.bf16 %v367_v3, %v368_v4  ;;  %v365_v8 = vld [vmem:[%s1431_s2 + $0x40] sm:$0xff]  ;;  %v363_v9 = vld [vmem:[%s1431_s2 + $0x30] sm:$0xff]  ;;  %v364_v10 = vld [vmem:[%s1431_s2 + $0x38] sm:$0xff]  ;;  %v1047_v13 = vpack.i.bf16 %v369_v6, %v370_v7  ;;  %s958_s18 = sshll.u32 %s1338_s17, 3  ;;  %s1185_s17 = smov 80  }
  0x17   : > { %1043 = vrot.lane.b32.xlu0 %v1042_v2, %s1180_s19  ;;  %378 = vmatpush.msra.mxu0 %v371_v0  ;;  %v366_v11 = vld [vmem:[%s1431_s2 + $0x48] sm:$0xff]  ;;  %v1062_v12 = vpack.i.bf16 %v363_v9, %v364_v10  ;;  %v361_v15 = vld [vmem:[%s1431_s2 + $0x20] sm:$0xff]  ;;  %v359_v18 = vld [vmem:[%s1431_s2 + $0x10] sm:$0xff]  ;;  %s332_s28 = scalar_lea.vmem %s1429_s0, %s958_s18  ;;  %s336_s13 = scalar_lea.vmem %s1430_s1, %s958_s18 }
  0x18   : > { %1053 = vrot.lane.b32.xlu1 %v1052_v5, %s1180_s19  ;;  %v1057_v14 = vpack.i.bf16 %v365_v8, %v366_v11  ;;  %v362_v16 = vld [vmem:[%s1431_s2 + $0x28] sm:$0xff]  ;;  %v360_v19 = vld [vmem:[%s1431_s2 + $0x18] sm:$0xff]  ;;  %v357_v20 = vld [vmem:[%s1431_s2] sm:$0xff]  ;;  %s1186_s18 = smov 72  }
  0x19   : > { %379 = vmatpush.msra.mxu0 %v370_v7  ;;  %1063 = vrot.lane.b32.xlu2 %v1062_v12, %s1180_s19  ;;  %v1067_v17 = vpack.i.bf16 %v361_v15, %v362_v16  ;;  %v358_v21 = vld [vmem:[%s1431_s2 + $0x8] sm:$0xff]  ;;  %v1072_v22 = vpack.i.bf16 %v359_v18, %v360_v19  ;;  %v355_v28 = vld [vmem:[%s332_s28] sm:$0xff]  ;;  %s1189_s28 = smov 24  }
  0x1a   : > { %v1077_v23 = vpack.i.bf16 %v357_v20, %v358_v21  ;;  %v1082_v29 = vld [vmem:[%s1432_s3] ss:$0 sm:$0xff] }
  0x1b   : > { %380 = vmatpush.msra.mxu0 %v369_v6  ;;  %v356_v50 = vld [vmem:[%s336_s13] sm:$0xff] }
  0x1d   : > { %381 = vmatpush.msra.mxu0 %v368_v4 }
  0x1f   : > { %1048 = vrot.lane.b32.xlu0 %v1047_v13, %s1180_s19  ;;  %382 = vmatpush.msra.mxu0 %v367_v3 }
  0x20   : > { %1058 = vrot.lane.b32.xlu1 %v1057_v14, %s1180_s19 }
  0x21   : > { %383 = vmatpush.msra.mxu0 %v366_v11  ;;  %1068 = vrot.lane.b32.xlu2 %v1067_v17, %s1180_s19 }
  0x23   : > { %384 = vmatpush.msra.mxu0 %v365_v8 }
  0x25   : > { %385 = vmatpush.msra.mxu0 %v364_v10 }
  0x27   : > { %1073 = vrot.lane.b32.xlu0 %v1072_v22, %s1180_s19  ;;  %386 = vmatpush.msra.mxu0 %v363_v9 }
  0x28   : > { %1078 = vrot.lane.b32.xlu1 %v1077_v23, %s1180_s19 }
  0x29   : > { %387 = vmatpush.msra.mxu0 %v362_v16  ;;  %461 = vrot.lane.b32.xlu2 %v1082_v29, %s1180_s19 }
  0x2b   : > { %388 = vmatpush.msra.mxu0 %v361_v15 }
  0x2d   : > { %389 = vmatpush.msra.mxu0 %v360_v19 }
  0x2f   : > { %390 = vmatpush.msra.mxu0 %v359_v18 }
  0x31   : > { %391 = vmatpush.msra.mxu0 %v358_v21 }
  0x33   : > { %392 = vmatpush.msra.mxu0 %v357_v20 }
  0x34   : > { %393 = vmatmul.f32.vlgmr.msra.gmra.mxu0 %v355_v28 }
  0x73   : > { %v1064_v32 = vpop.permute.xlu2 %1063 }
  0x74   : > { %v1065_v40 = vunpack.i.l.bf16 %v1064_v32  ;;  %v1066_v41 = vunpack.i.h.bf16 %v1064_v32 }
  0x7b   : > { %v1069_v39 = vpop.permute.xlu2 %1068 }
  0x7c   : > { %v1070_v42 = vunpack.i.l.bf16 %v1069_v39  ;;  %v1071_v44 = vunpack.i.h.bf16 %v1069_v39 }
  0x83   : > { %v462_v51 = vpop.permute.xlu2 %461 }
  0x89   : > { %v1044_v24 = vpop.permute.xlu0 %1043 }
  0x8a   : > { %v1045_v25 = vunpack.i.l.bf16 %v1044_v24  ;;  %v1054_v26 = vpop.permute.xlu1 %1053  ;;  %v1046_v27 = vunpack.i.h.bf16 %v1044_v24 }
  0x8b   : > { %v1055_v35 = vunpack.i.l.bf16 %v1054_v26  ;;  %v1056_v36 = vunpack.i.h.bf16 %v1054_v26 }
  0x8c   : > { %464 = vmatpush.msra.mxu1 %v1045_v25 }
  0x8e   : > { %465 = vmatpush.msra.mxu1 %v1046_v27 }
  0x91   : > { %v1049_v30 = vpop.permute.xlu0 %1048 }
  0x92   : > { %v1050_v31 = vunpack.i.l.bf16 %v1049_v30  ;;  %v1051_v33 = vunpack.i.h.bf16 %v1049_v30  ;;  %v1059_v34 = vpop.permute.xlu1 %1058 }
  0x93   : > { %v1060_v37 = vunpack.i.l.bf16 %v1059_v34  ;;  %v1061_v38 = vunpack.i.h.bf16 %v1059_v34 }
  0x94   : > { %466 = vmatpush.msra.mxu1 %v1050_v31 }
  0x96   : > { %467 = vmatpush.msra.mxu1 %v1051_v33 }
  0x98   : > { %468 = vmatpush.msra.mxu1 %v1055_v35 }
  0x99   : > { %v1074_v43 = vpop.permute.xlu0 %1073 }
  0x9a   : > { %469 = vmatpush.msra.mxu1 %v1056_v36  ;;  %v1075_v45 = vunpack.i.l.bf16 %v1074_v43  ;;  %v1079_v46 = vpop.permute.xlu1 %1078  ;;  %v1076_v47 = vunpack.i.h.bf16 %v1074_v43 }
  0x9b   : > { %v1080_v48 = vunpack.i.l.bf16 %v1079_v46  ;;  %v1081_v49 = vunpack.i.h.bf16 %v1079_v46  ;;  %v767_v46 = vld [vmem:[%s1433_s4 + $0x18] sm:$0xff] }
  0x9c   : > { %470 = vmatpush.msra.mxu1 %v1060_v37 }
  0x9e   : > { %471 = vmatpush.msra.mxu1 %v1061_v38 }
  0xa0   : > { %472 = vmatpush.msra.mxu1 %v1065_v40 }
  0xa2   : > { %473 = vmatpush.msra.mxu1 %v1066_v41 }
  0xa4   : > { %474 = vmatpush.msra.mxu1 %v1070_v42 }
  0xa6   : > { %475 = vmatpush.msra.mxu1 %v1071_v44 }
  0xa8   : > { %476 = vmatpush.msra.mxu1 %v1075_v45 }
  0xaa   : > { %477 = vmatpush.msra.mxu1 %v1076_v47  ;;  %v766_v47 = vld [vmem:[%s1433_s4 + $0x10] sm:$0xff] }
  0xac   : > { %478 = vmatpush.msra.mxu1 %v1080_v48  ;;  %v765_v48 = vld [vmem:[%s1433_s4 + $0x8] sm:$0xff] }
  0xae   : > { %479 = vmatpush.msra.mxu1 %v1081_v49  ;;  %v764_v49 = vld [vmem:[%s1433_s4] sm:$0xff] }
  0xaf   : > { %480 = vmatmul.f32.vlgmr.msra.gmra.mxu1 %v356_v50 }
  0xb1   : > { %v394_v53 = vpop.f32.mrf.mxu0 }
  0xb2   : > { %v395_v55 = vadd.f32 %v1082_v29, %v394_v53 }
 0x12c   : > { %v481_v52 = vpop.f32.mrf.mxu1 }
 0x12d   : > { %v482_v54 = vadd.f32 %v481_v52, %v462_v51 }
 0x12f   : > { %551 = vrot.lane.b32.xlu2 %v482_v54, %s1181_s14  ;;  %520 = vrot.lane.b32.xlu1 %v482_v54, %s1180_s19  ;;  %s1184_s19 = smov 88  }
 0x130   : > { %960 = vmatpush.xpose.msk.msra.mxu2 %vm484_vm0, %v482_v54 }
 0x133   : > { %961 = vmatmul.msk.f32.vlgmr.msra.gmra.mxu2 %vm484_vm0, %v395_v55 }
 0x137   : > { %622 = vrot.lane.b32.xlu2 %v482_v54, %s1182_s15  ;;  %549 = vrot.lane.b32.xlu1 %v395_v55, %s1181_s14 }
 0x13f   : > { %693 = vrot.lane.b32.xlu2 %v482_v54, %s1183_s16  ;;  %620 = vrot.lane.b32.xlu1 %v395_v55, %s1182_s15 }
 0x147   : > { %691 = vrot.lane.b32.xlu1 %v395_v55, %s1183_s16 }
 0x189   : > { %v552_v57 = vpop.permute.xlu2 %551 }
 0x191   : > { %v623_v63 = vpop.permute.xlu2 %622 }
 0x199   : > { %v694_v3 = vpop.permute.xlu2 %693 }
 0x1a1   : > { %v521_v56 = vpop.permute.xlu1 %520 }
 0x1a2   : > { %541 = vmatpush.msra.mxu3 %v521_v56 }
 0x1a4   : > { %963 = vmatpush.xpose.msk.msrb.mxu3 %vm484_vm0, %v552_v57 }
 0x1a9   : > { %v550_v1 = vpop.permute.xlu1 %549 }
 0x1b1   : > { %v621_v4 = vpop.permute.xlu1 %620 }
 0x1b6   : > { %v508_v58 = vpop.f32.mrf.mxu2 }
 0x1b7   : > { %v511_v59 = vsel %vm484_vm0, %v508_v58, -inf }
 0x1b8   : > { %512 = vmax.xlane.f32.xlu0 %v511_v59 }
 0x1b9   : > { %v692_v5 = vpop.permute.xlu1 %691 }
 0x1cc   : > { %586 = vrot.lane.b32.xlu0 %v482_v54, %s1184_s19  ;;  %s323_s19 = sand.u32 1, %s1162_s22  }
 0x1cd   : > { %s805_s14 = scalar_lea.sflag [#allocation5], %s323_s19 }
 0x22b   : > { %v513_v60 = vpop.xlane.xlu0 %512 }
 0x22c   : > { %v514_v61 = vsub.f32 %v508_v58, %v513_v60 }
 0x22e   : > { %v515_v62 = vmul.f32 1.442695, %v514_v61 }
 0x230   : > { %1084 = vpow2.f32 %v515_v62 }
 0x236   : > { %v1085_v0 = vpop.eup %1084 }
 0x237   : > { %962 = vmatmul.msk.f32.vlgmr.msra.gmra.mxu3 %vm484_vm0, %v1085_v0  ;;  %v517_v13 = vsel %vm484_vm0, %v1085_v0, 0.0 }
 0x238   : > { %966 = vmatpush.xpose.msk.msra.mxu3 %vm484_vm0, %v623_v63 }
 0x23e   : > { %v587_v2 = vpop.permute.xlu0 %586 }
 0x23f   : > { %964 = vmatmul.msk.f32.vlgmr.msrb.gmra.mxu3 %vm484_vm0, %v550_v1  ;;  %607 = vmatpush.msrb.mxu2 %v587_v2 }
 0x240   : > { %969 = vmatpush.xpose.msk.msrb.mxu3 %vm484_vm0, %v694_v3 }
 0x247   : > { %967 = vmatmul.msk.f32.vlgmr.msra.gmra.mxu3 %vm484_vm0, %v621_v4 }
 0x248   : > { %784 = vmatpush.msra.mxu3 %v767_v46 }
 0x24a   : > { %785 = vmatpush.msra.mxu3 %v766_v47 }
 0x24c   : > { %786 = vmatpush.msra.mxu3 %v765_v48 }
 0x24e   : > { %787 = vmatpush.msra.mxu3 %v764_v49 }
 0x24f   : > { %970 = vmatmul.msk.f32.vlgmr.msrb.gmra.mxu3 %vm484_vm0, %v692_v5 }
 0x2ba   : > { %v543_v6 = vpop.f32.mrf.mxu3 }
 0x2c2   : > { %v574_v7 = vpop.f32.mrf.mxu3 }
 0x2c3   : > { %v577_v8 = vsel %vm484_vm0, %v574_v7, -inf }
 0x2c4   : > { %578 = vmax.xlane.f32.xlu2 %v577_v8 }
 0x2ca   : > { %v645_v9 = vpop.f32.mrf.mxu3 }
 0x2cb   : > { %v648_v10 = vsel %vm484_vm0, %v645_v9, -inf }
 0x2cc   : > { %649 = vmax.xlane.f32.xlu1 %v648_v10 }
 0x2d2   : > { %v716_v11 = vpop.f32.mrf.mxu3 }
 0x2d3   : > { %v719_v12 = vsel %vm484_vm0, %v716_v11, -inf }
 0x2d4   : > { %720 = vmax.xlane.f32.xlu0 %v719_v12 }
 0x2dc   : > { %657 = vrot.lane.b32.xlu2 %v482_v54, %s1185_s17  ;;  %518 = vadd.xlane.f32.xlu0 %v517_v13  ;;  %s957_s17 = sshll.u32 %s323_s19, 3 }
 0x2dd   : > { %s325_s11 = scalar_lea.vmem [#allocation4], %s957_s17 }
 0x2de   : > { %s818_s12 = sshll.u32 %s325_s11, 4  ;;  %s819_s12 = int_to_ptr.vmem [resolvable:$true] %s818_s12 }
 0x2e5   : > { %728 = vrot.lane.b32.xlu1 %v482_v54, %s1186_s18  ;;  %s974_s18 = sshll.u32 %s1170_s24, 3  ;;  %v1083_v54 = vld [vmem:[%s1434_s5] ss:$0 sm:$0xff] }
 0x337   : > { %v579_v14 = vpop.xlane.xlu2 %578 }
 0x338   : > { %v580_v15 = vsub.f32 %v574_v7, %v579_v14 }
 0x33a   : > { %v581_v16 = vmul.f32 1.442695, %v580_v15 }
 0x33c   : > { %1086 = vpow2.f32 %v581_v16 }
 0x33f   : > { %v650_v17 = vpop.xlane.xlu1 %649  ;;  %v658_v18 = vpop.permute.xlu2 %657 }
 0x340   : > { %v651_v19 = vsub.f32 %v645_v9, %v650_v17  ;;  %678 = vmatpush.msra.mxu2 %v658_v18 }
 0x342   : > { %v1087_v20 = vpop.eup %1086  ;;  %v652_v21 = vmul.f32 1.442695, %v651_v19 }
 0x343   : > { %965 = vmatmul.msk.f32.vlgmr.msrb.gmra.mxu2 %vm484_vm0, %v1087_v20  ;;  %v583_v22 = vsel %vm484_vm0, %v1087_v20, 0.0 }
 0x344   : > { %1088 = vpow2.f32 %v652_v21  ;;  %584 = vadd.xlane.f32.xlu2 %v583_v22 }
 0x347   : > { %v721_v23 = vpop.xlane.xlu0 %720 }
 0x348   : > { %v722_v24 = vsub.f32 %v716_v11, %v721_v23 }
 0x34a   : > { %v1089_v25 = vpop.eup %1088  ;;  %v723_v26 = vmul.f32 1.442695, %v722_v24 }
 0x34b   : > { %968 = vmatmul.msk.f32.vlgmr.msra.gmra.mxu2 %vm484_vm0, %v1089_v25  ;;  %v654_v27 = vsel %vm484_vm0, %v1089_v25, 0.0 }
 0x34c   : > { %1090 = vpow2.f32 %v723_v26  ;;  %655 = vadd.xlane.f32.xlu1 %v654_v27 }
 0x34f   : > { %v519_v28 = vpop.xlane.xlu0 %518 }
 0x350   : > { %1092 = vrcp.f32 %v519_v28 }
 0x352   : > { %v1091_v29 = vpop.eup %1090 }
 0x353   : > { %v725_v30 = vsel %vm484_vm0, %v1091_v29, 0.0 }
 0x354   : > { %726 = vadd.xlane.f32.xlu0 %v725_v30 }
 0x356   : > { %v1093_v31 = vpop.eup %1092 }
 0x357   : > { %v729_v32 = vpop.permute.xlu1 %728  ;;  %v547_v33 = vmul.f32 %v1093_v31, %v543_v6 }
 0x358   : > { %749 = vmatpush.msrb.mxu2 %v729_v32 }
 0x359   : > { %971 = vmatmul.msk.f32.vlgmr.msrb.gmra.mxu2 %vm484_vm0, %v1091_v29  ;;  %548 = vst.msk [vmem:[#allocation3] sm:$0xff] %vm484_vm0, %v547_v33 }
 0x3b7   : > { %v585_v34 = vpop.xlane.xlu2 %584 }
 0x3b8   : > { %1094 = vrcp.f32 %v585_v34 }
 0x3be   : > { %v1095_v36 = vpop.eup %1094 }
 0x3bf   : > { %v656_v35 = vpop.xlane.xlu1 %655 }
 0x3c0   : > { %1096 = vrcp.f32 %v656_v35 }
 0x3c6   : > { %v609_v37 = vpop.f32.mrf.mxu2  ;;  %v1097_v39 = vpop.eup %1096 }
 0x3c7   : > { %v613_v38 = vmul.f32 %v1095_v36, %v609_v37  ;;  %v727_v42 = vpop.xlane.xlu0 %726 }
 0x3c8   : > { %1098 = vrcp.f32 %v727_v42 }
 0x3c9   : > { %615 = vrot.lane.b32.xlu0 %v613_v38, %s1187_s20  ;;  %s1120_s20 = scalar_lea.hbm %s1435_s6, 16 }
 0x3ce   : > { %v680_v40 = vpop.f32.mrf.mxu2  ;;  %v1099_v43 = vpop.eup %1098 }
 0x3cf   : > { %v684_v41 = vmul.f32 %v1097_v39, %v680_v40 }
 0x3d1   : > { %686 = vrot.lane.b32.xlu2 %v684_v41, %s1188_s27 }
 0x3dc   : > { %v751_v44 = vpop.f32.mrf.mxu2 }
 0x3dd   : > { %v755_v45 = vmul.f32 %v1099_v43, %v751_v44 }
 0x3df   : > { %757 = vrot.lane.b32.xlu0 %v755_v45, %s1189_s28  ;;  %s816_s28 = scalar_lea.hbm %s1435_s6, %s974_s18 }
 0x3e0   : > { %s820_s13 = sshll.u32 %s816_s28, 4  ;;  %s821_s13 = int_to_ptr.hbm [resolvable:$true] %s820_s13 }
 0x3e1   : > { %s1114_s15 = sshra.s32 %s821_s13, 4  ;;  %s1115_s15 = int_to_ptr.hbm [resolvable:$true] %s1114_s15 }
 0x3e2   : > { %s1116_s24 = scalar_lea.hbm %s1115_s15, 8  ;;  %p1121_p1 = scmp.lt.s32.totalorder %s1115_s15, %s1435_s6 }
 0x3e3   : > { %p1117_p12 = scmp.ne.s32.totalorder %s1115_s15, %s1116_s24  ;;  %p1122_p2 = scmp.lt.s32.totalorder %s1120_s20, %s1116_s24 }
 0x3e5   : > { %p1118_p13 = pnand %p1117_p12, %p1265_p4  ;;  %p1123_p3 = por %p1122_p2, %p1121_p1 }
 0x3e7   : > { %p1119_p0 = pneg %p1118_p13 }
 0x3e9   : > { %p1124_p5 = pnand %p1123_p3, %p1119_p0 }
 0x42b   : > { %v687_v51 = vpop.permute.xlu2 %686 }
 0x43b   : > { %v616_v50 = vpop.permute.xlu0 %615 }
 0x43c   : > { %619 = vst.msk [vmem:[#allocation3] sm:$0xff] %vm618_vm1, %v616_v50 }
 0x43d   : > { %690 = vst.msk [vmem:[#allocation3] sm:$0xff] %vm689_vm2, %v687_v51 }
 0x451   : > { %v758_v52 = vpop.permute.xlu0 %757 }
 0x452   : > { %761 = vst.msk [vmem:[#allocation3] sm:$0xff] %vm760_vm3, %v758_v52 }
 0x459   : > { %v763_v53 = vld [vmem:[#allocation3] sm:$0xff] }
 0x45a   : > { %972 = vmatmul.msk.f32.vlgmr.msra.gmra.mxu3 %vm768_vm4, %v763_v53 }
 0x4dd   : > { %v789_v55 = vpop.f32.mrf.mxu3 }
 0x4de   : > { %v802_v56 = vadd.f32 %v1083_v54, %v789_v55 }
 0x4e0   : > { %803 = vst [vmem:[%s325_s11] sm:$0xff] %v802_v56 }
 0x4e1   : > { %1127 = shalt.err (!%p1124_p5)
}
 0x4e2   : > { %977 = dma.vmem_to_hbm [thread:$0]  (%p1265_p4), %s819_s12, 128, %s821_s13, %s805_s14  }
 0x4e3 PF: > { %p983_p6 = scmp.ge.s32.totalorder %s1178_s26, 2  ;;  %s832_s19 = sand.u32 1, %s1158_s21  }
 0x4e4   : > { %s833_s28 = scalar_lea.sflag [#allocation5], %s832_s19 }
 0x4e5   : > { %p980_p7 = pnand %p983_p6, %p1272_p8 }
 0x4e7   : > { %p981_p9 = pneg %p980_p7 }
 0x4e9   : > { %1153 = dma.done.wait (%p981_p9), %s833_s28, 128  }
 0x4ea   : > { %1155 = vsyncadd (%p981_p9), %s833_s28, 4294967168  ;;  %s19_s26 = sadd.s32 1, %s1178_s26   ;;  %s1438_s21 = smov %s1162_s22 }
 0x4eb   : > { %p16_p10 = scmp.ge.s32.totalorder %s19_s26, 4   ;;  %s1439_s22 = smov %s1166_s23 }
 0x4ec   : > { %s1440_s23 = smov %s1278_s10  ;;  %s1441_s24 = smov %s1174_s25 }
 0x4ed   : > { %s1442_s25 = smov %s1444_s29  ;;  %18 = sbr.rel (!%p16_p10) target bundleno = 4 (0x4), region = 99 }
 0x4f2   :  { %839 = vsyncpa [#allocation5], 1 }
 0x4f3   :  { %841 = vsyncpa [#allocation5 + $0x1], 1 }

</bundles_post_ra>
